<compile_context>
chip_gen: v7x
topology: tpu7x:2x2x1
jax: 0.10.0
libtpu: 0.0.40
codegen_flags: <defaults>
</compile_context>

<pallas_src>
import jax
import jax.numpy as jnp
from jax.experimental import pallas as pl
from jax.experimental.pallas import tpu as pltpu
import numpy as np


def _round_up(n, m):
    return ((n + m - 1) // m) * m


def spectral_mul_kernel(x_ref, wre_ref, wim_ref, or_ref, oi_ref):
    """Per-mode complex channel mixing, real/imag packed along channels.

      x_ref   : (B, 2*Cin, Mp)    [xr ; xi] stacked on the channel axis
      wre_ref : (Cout, 2*Cin, Mp) [wr ; -wi]  -> real part of output
      wim_ref : (Cout, 2*Cin, Mp) [wi ;  wr]  -> imag part of output
      or_ref  : (B, Cout, Mp)
      oi_ref  : (B, Cout, Mp)
    """
    wre = wre_ref[...]                       # (Cout, 2*Cin, Mp), loaded once
    wim = wim_ref[...]
    B, C2, _ = x_ref.shape
    for b in range(B):                       # tiny static loops, fully unrolled
        x_b0 = x_ref[b, 0:1, :]              # (1, Mp)
        acc_r = x_b0 * wre[:, 0, :]          # (Cout, Mp) broadcast FMA on the VPU
        acc_i = x_b0 * wim[:, 0, :]
        for c in range(1, C2):
            x_bc = x_ref[b, c:c + 1, :]      # (1, Mp)
            acc_r = acc_r + x_bc * wre[:, c, :]
            acc_i = acc_i + x_bc * wim[:, c, :]
        or_ref[b, :, :] = acc_r              # lane-dense, unmasked stores
        oi_ref[b, :, :] = acc_i


def pack_spectral_weights(w1c, w2c, wavenumber1, wavenumber2):
    """One-time (parameter-init) packing of the complex FNO weights.

    w1c, w2c: (Cin, Cout, k1, k2) complex64.
    Returns (wre, wim), each (Cout, 2*Cin, Mp) float32 with Mp = round_up(2*k1*k2, 128).
    """
    Cin, Cout, k1, k2 = w1c.shape
    assert (k1, k2) == (wavenumber1, wavenumber2)
    M = 2 * k1 * k2
    Mp = _round_up(M, 128)

    wc = jnp.concatenate([w1c, w2c], axis=2)              # (Cin, Cout, 2*k1, k2)
    wc = jnp.transpose(wc, (1, 0, 2, 3)).reshape(Cout, Cin, M)
    wr = jnp.real(wc).astype(jnp.float32)
    wi = jnp.imag(wc).astype(jnp.float32)
    pad = Mp - M
    wr = jnp.pad(wr, ((0, 0), (0, 0), (0, pad)))
    wi = jnp.pad(wi, ((0, 0), (0, 0), (0, pad)))

    wre = jnp.concatenate([wr, -wi], axis=1)               # (Cout, 2*Cin, Mp)
    wim = jnp.concatenate([wi, wr], axis=1)                # (Cout, 2*Cin, Mp)
    return wre, wim


def fourier_conv_2d_forward(x, wre, wim, wavenumber1, wavenumber2):
    """x: (B, Cin, H, W) float32; wre/wim: packed weights from pack_spectral_weights."""
    B, Cin, H, W = x.shape
    Cout = wre.shape[0]
    assert wre.shape[1] == 2 * Cin
    k1, k2 = wavenumber1, wavenumber2
    Wr = W // 2 + 1
    M = 2 * k1 * k2
    Mp = wre.shape[-1]
    assert 2 * k1 <= H and k2 <= Wr

    # --- FFT (plain JAX) ---
    x_ft = jnp.fft.rfft2(x)                                # (B, Cin, H, Wr) complex64

    # gather retained modes: top k1 rows and bottom k1 rows, first k2 cols
    top = x_ft[:, :, :k1, :k2]
    bot = x_ft[:, :, H - k1:, :k2]
    xc = jnp.concatenate([top, bot], axis=2).reshape(B, Cin, M)
    xr = jnp.real(xc).astype(jnp.float32)
    xi = jnp.imag(xc).astype(jnp.float32)
    X = jnp.concatenate([xr, xi], axis=1)                  # (B, 2*Cin, M)
    X = jnp.pad(X, ((0, 0), (0, 0), (0, Mp - M)))          # lane-dense (B, 2*Cin, Mp)

    # --- Pallas kernel: complex mode mixing (single invocation, all-VMEM) ---
    out_r, out_i = pl.pallas_call(
        spectral_mul_kernel,
        out_shape=(jax.ShapeDtypeStruct((B, Cout, Mp), jnp.float32),
                   jax.ShapeDtypeStruct((B, Cout, Mp), jnp.float32)),
        in_specs=[pl.BlockSpec(memory_space=pltpu.MemorySpace.VMEM)] * 3,
        out_specs=(pl.BlockSpec(memory_space=pltpu.MemorySpace.VMEM),
                   pl.BlockSpec(memory_space=pltpu.MemorySpace.VMEM)),
    )(X, wre, wim)

    # drop the zero-padded modes, back to complex, un-flatten
    out_c = jax.lax.complex(out_r[:, :, :M], out_i[:, :, :M])
    out_c = out_c.reshape(B, Cout, 2 * k1, k2)

    # assemble the full spectrum with pad + concat (no zeros-buffer scatter)
    top_o = jnp.pad(out_c[:, :, :k1, :], ((0, 0), (0, 0), (0, 0), (0, Wr - k2)))
    bot_o = jnp.pad(out_c[:, :, k1:, :], ((0, 0), (0, 0), (0, 0), (0, Wr - k2)))
    mid = jnp.zeros((B, Cout, H - 2 * k1, Wr), dtype=out_c.dtype)
    out_ft = jnp.concatenate([top_o, mid, bot_o], axis=2)  # (B, Cout, H, Wr)

    # --- inverse FFT (plain JAX) ---
    return jnp.fft.irfft2(out_ft, s=(H, W))


def fourier_conv_2d_reference(x, w1c, w2c, wavenumber1, wavenumber2):
    """Pure-JAX reference mirroring the PyTorch forward."""
    B, Cin, H, W = x.shape
    Cout = w1c.shape[1]
    k1, k2 = wavenumber1, wavenumber2
    x_ft = jnp.fft.rfft2(x)
    out_ft = jnp.zeros((B, Cout, H, W // 2 + 1), dtype=jnp.complex64)
    out_ft = out_ft.at[:, :, :k1, :k2].set(
        jnp.einsum('bixy,ioxy->boxy', x_ft[:, :, :k1, :k2], w1c))
    out_ft = out_ft.at[:, :, H - k1:, :k2].set(
        jnp.einsum('bixy,ioxy->boxy', x_ft[:, :, H - k1:, :k2], w2c))
    return jnp.fft.irfft2(out_ft, s=(H, W))


if __name__ == "__main__":
    B, Cin, Cout = 2, 4, 4
    H, W = 16, 16
    k1, k2 = 6, 6

    key = jax.random.PRNGKey(0)
    kx, kw1, kw2 = jax.random.split(key, 3)

    x = jax.random.normal(kx, (B, Cin, H, W), dtype=jnp.float32)

    # __init__: scale * torch.rand(in_, out_, k1, k2, cfloat) -> uniform [0,1)
    # for both real and imag parts, scaled by 1/(in_*out_).
    scale = 1.0 / (Cin * Cout)
    w1_ri = scale * jax.random.uniform(kw1, (Cin, Cout, k1, k2, 2), dtype=jnp.float32)
    w2_ri = scale * jax.random.uniform(kw2, (Cin, Cout, k1, k2, 2), dtype=jnp.float32)
    w1c = (w1_ri[..., 0] + 1j * w1_ri[..., 1]).astype(jnp.complex64)
    w2c = (w2_ri[..., 0] + 1j * w2_ri[..., 1]).astype(jnp.complex64)

    # one-time weight packing (hoisted out of the forward path)
    wre, wim = pack_spectral_weights(w1c, w2c, k1, k2)

    fwd = jax.jit(fourier_conv_2d_forward, static_argnums=(3, 4))
    y = jax.block_until_ready(fwd(x, wre, wim, k1, k2))

    y_ref = jax.block_until_ready(
        fourier_conv_2d_reference(x, w1c, w2c, k1, k2))

    assert y.shape == (B, Cout, H, W)
    np.testing.assert_allclose(np.asarray(y), np.asarray(y_ref),
                               rtol=1e-4, atol=1e-5)
    print("KERNEL_OK")
</pallas_src>

<mosaic_0001>
module attributes {stable_mosaic.version = 11 : i64} {
  func.func @spectral_mul_kernel(%arg0: memref<2x8x128xf32, #tpu.memory_space<vmem>>, %arg1: memref<4x8x128xf32, #tpu.memory_space<vmem>>, %arg2: memref<4x8x128xf32, #tpu.memory_space<vmem>>, %arg3: memref<2x4x128xf32, #tpu.memory_space<vmem>>, %arg4: memref<2x4x128xf32, #tpu.memory_space<vmem>>) attributes {dimension_semantics = [], scalar_prefetch = 0 : i64, scratch_operands = 0 : i64, tpu.core_type = #tpu.core_type<tc>} {
    %c0 = arith.constant 0 : index
    %c0_0 = arith.constant 0 : index
    %c0_1 = arith.constant 0 : index
    %0 = vector.load %arg1[%c0, %c0_0, %c0_1] : memref<4x8x128xf32, #tpu.memory_space<vmem>>, vector<4x8x128xf32>
    %c0_2 = arith.constant 0 : index
    %c0_3 = arith.constant 0 : index
    %c0_4 = arith.constant 0 : index
    %1 = vector.load %arg2[%c0_2, %c0_3, %c0_4] : memref<4x8x128xf32, #tpu.memory_space<vmem>>, vector<4x8x128xf32>
    %c0_5 = arith.constant 0 : index
    %c0_6 = arith.constant 0 : index
    %c0_7 = arith.constant 0 : index
    %2 = vector.load %arg0[%c0_5, %c0_6, %c0_7] : memref<2x8x128xf32, #tpu.memory_space<vmem>>, vector<1x1x128xf32>
    %3 = vector.shape_cast %2 : vector<1x1x128xf32> to vector<1x128xf32>
    %4 = vector.extract_strided_slice %0 {offsets = [0, 0, 0], sizes = [4, 1, 128], strides = [1, 1, 1]} : vector<4x8x128xf32> to vector<4x1x128xf32>
    %5 = vector.shape_cast %4 : vector<4x1x128xf32> to vector<4x128xf32>
    %6 = vector.broadcast %3 : vector<1x128xf32> to vector<4x128xf32>
    %7 = arith.mulf %6, %5 : vector<4x128xf32>
    %8 = vector.extract_strided_slice %1 {offsets = [0, 0, 0], sizes = [4, 1, 128], strides = [1, 1, 1]} : vector<4x8x128xf32> to vector<4x1x128xf32>
    %9 = vector.shape_cast %8 : vector<4x1x128xf32> to vector<4x128xf32>
    %10 = vector.broadcast %3 : vector<1x128xf32> to vector<4x128xf32>
    %11 = arith.mulf %10, %9 : vector<4x128xf32>
    %c0_8 = arith.constant 0 : index
    %c1 = arith.constant 1 : index
    %c0_9 = arith.constant 0 : index
    %12 = vector.load %arg0[%c0_8, %c1, %c0_9] : memref<2x8x128xf32, #tpu.memory_space<vmem>>, vector<1x1x128xf32>
    %13 = vector.shape_cast %12 : vector<1x1x128xf32> to vector<1x128xf32>
    %14 = vector.extract_strided_slice %0 {offsets = [0, 1, 0], sizes = [4, 1, 128], strides = [1, 1, 1]} : vector<4x8x128xf32> to vector<4x1x128xf32>
    %15 = vector.shape_cast %14 : vector<4x1x128xf32> to vector<4x128xf32>
    %16 = vector.broadcast %13 : vector<1x128xf32> to vector<4x128xf32>
    %17 = arith.mulf %16, %15 : vector<4x128xf32>
    %18 = arith.addf %7, %17 : vector<4x128xf32>
    %19 = vector.extract_strided_slice %1 {offsets = [0, 1, 0], sizes = [4, 1, 128], strides = [1, 1, 1]} : vector<4x8x128xf32> to vector<4x1x128xf32>
    %20 = vector.shape_cast %19 : vector<4x1x128xf32> to vector<4x128xf32>
    %21 = vector.broadcast %13 : vector<1x128xf32> to vector<4x128xf32>
    %22 = arith.mulf %21, %20 : vector<4x128xf32>
    %23 = arith.addf %11, %22 : vector<4x128xf32>
    %c0_10 = arith.constant 0 : index
    %c2 = arith.constant 2 : index
    %c0_11 = arith.constant 0 : index
    %24 = vector.load %arg0[%c0_10, %c2, %c0_11] : memref<2x8x128xf32, #tpu.memory_space<vmem>>, vector<1x1x128xf32>
    %25 = vector.shape_cast %24 : vector<1x1x128xf32> to vector<1x128xf32>
    %26 = vector.extract_strided_slice %0 {offsets = [0, 2, 0], sizes = [4, 1, 128], strides = [1, 1, 1]} : vector<4x8x128xf32> to vector<4x1x128xf32>
    %27 = vector.shape_cast %26 : vector<4x1x128xf32> to vector<4x128xf32>
    %28 = vector.broadcast %25 : vector<1x128xf32> to vector<4x128xf32>
    %29 = arith.mulf %28, %27 : vector<4x128xf32>
    %30 = arith.addf %18, %29 : vector<4x128xf32>
    %31 = vector.extract_strided_slice %1 {offsets = [0, 2, 0], sizes = [4, 1, 128], strides = [1, 1, 1]} : vector<4x8x128xf32> to vector<4x1x128xf32>
    %32 = vector.shape_cast %31 : vector<4x1x128xf32> to vector<4x128xf32>
    %33 = vector.broadcast %25 : vector<1x128xf32> to vector<4x128xf32>
    %34 = arith.mulf %33, %32 : vector<4x128xf32>
    %35 = arith.addf %23, %34 : vector<4x128xf32>
    %c0_12 = arith.constant 0 : index
    %c3 = arith.constant 3 : index
    %c0_13 = arith.constant 0 : index
    %36 = vector.load %arg0[%c0_12, %c3, %c0_13] : memref<2x8x128xf32, #tpu.memory_space<vmem>>, vector<1x1x128xf32>
    %37 = vector.shape_cast %36 : vector<1x1x128xf32> to vector<1x128xf32>
    %38 = vector.extract_strided_slice %0 {offsets = [0, 3, 0], sizes = [4, 1, 128], strides = [1, 1, 1]} : vector<4x8x128xf32> to vector<4x1x128xf32>
    %39 = vector.shape_cast %38 : vector<4x1x128xf32> to vector<4x128xf32>
    %40 = vector.broadcast %37 : vector<1x128xf32> to vector<4x128xf32>
    %41 = arith.mulf %40, %39 : vector<4x128xf32>
    %42 = arith.addf %30, %41 : vector<4x128xf32>
    %43 = vector.extract_strided_slice %1 {offsets = [0, 3, 0], sizes = [4, 1, 128], strides = [1, 1, 1]} : vector<4x8x128xf32> to vector<4x1x128xf32>
    %44 = vector.shape_cast %43 : vector<4x1x128xf32> to vector<4x128xf32>
    %45 = vector.broadcast %37 : vector<1x128xf32> to vector<4x128xf32>
    %46 = arith.mulf %45, %44 : vector<4x128xf32>
    %47 = arith.addf %35, %46 : vector<4x128xf32>
    %c0_14 = arith.constant 0 : index
    %c4 = arith.constant 4 : index
    %c0_15 = arith.constant 0 : index
    %48 = vector.load %arg0[%c0_14, %c4, %c0_15] : memref<2x8x128xf32, #tpu.memory_space<vmem>>, vector<1x1x128xf32>
    %49 = vector.shape_cast %48 : vector<1x1x128xf32> to vector<1x128xf32>
    %50 = vector.extract_strided_slice %0 {offsets = [0, 4, 0], sizes = [4, 1, 128], strides = [1, 1, 1]} : vector<4x8x128xf32> to vector<4x1x128xf32>
    %51 = vector.shape_cast %50 : vector<4x1x128xf32> to vector<4x128xf32>
    %52 = vector.broadcast %49 : vector<1x128xf32> to vector<4x128xf32>
    %53 = arith.mulf %52, %51 : vector<4x128xf32>
    %54 = arith.addf %42, %53 : vector<4x128xf32>
    %55 = vector.extract_strided_slice %1 {offsets = [0, 4, 0], sizes = [4, 1, 128], strides = [1, 1, 1]} : vector<4x8x128xf32> to vector<4x1x128xf32>
    %56 = vector.shape_cast %55 : vector<4x1x128xf32> to vector<4x128xf32>
    %57 = vector.broadcast %49 : vector<1x128xf32> to vector<4x128xf32>
    %58 = arith.mulf %57, %56 : vector<4x128xf32>
    %59 = arith.addf %47, %58 : vector<4x128xf32>
    %c0_16 = arith.constant 0 : index
    %c5 = arith.constant 5 : index
    %c0_17 = arith.constant 0 : index
    %60 = vector.load %arg0[%c0_16, %c5, %c0_17] : memref<2x8x128xf32, #tpu.memory_space<vmem>>, vector<1x1x128xf32>
    %61 = vector.shape_cast %60 : vector<1x1x128xf32> to vector<1x128xf32>
    %62 = vector.extract_strided_slice %0 {offsets = [0, 5, 0], sizes = [4, 1, 128], strides = [1, 1, 1]} : vector<4x8x128xf32> to vector<4x1x128xf32>
    %63 = vector.shape_cast %62 : vector<4x1x128xf32> to vector<4x128xf32>
    %64 = vector.broadcast %61 : vector<1x128xf32> to vector<4x128xf32>
    %65 = arith.mulf %64, %63 : vector<4x128xf32>
    %66 = arith.addf %54, %65 : vector<4x128xf32>
    %67 = vector.extract_strided_slice %1 {offsets = [0, 5, 0], sizes = [4, 1, 128], strides = [1, 1, 1]} : vector<4x8x128xf32> to vector<4x1x128xf32>
    %68 = vector.shape_cast %67 : vector<4x1x128xf32> to vector<4x128xf32>
    %69 = vector.broadcast %61 : vector<1x128xf32> to vector<4x128xf32>
    %70 = arith.mulf %69, %68 : vector<4x128xf32>
    %71 = arith.addf %59, %70 : vector<4x128xf32>
    %c0_18 = arith.constant 0 : index
    %c6 = arith.constant 6 : index
    %c0_19 = arith.constant 0 : index
    %72 = vector.load %arg0[%c0_18, %c6, %c0_19] : memref<2x8x128xf32, #tpu.memory_space<vmem>>, vector<1x1x128xf32>
    %73 = vector.shape_cast %72 : vector<1x1x128xf32> to vector<1x128xf32>
    %74 = vector.extract_strided_slice %0 {offsets = [0, 6, 0], sizes = [4, 1, 128], strides = [1, 1, 1]} : vector<4x8x128xf32> to vector<4x1x128xf32>
    %75 = vector.shape_cast %74 : vector<4x1x128xf32> to vector<4x128xf32>
    %76 = vector.broadcast %73 : vector<1x128xf32> to vector<4x128xf32>
    %77 = arith.mulf %76, %75 : vector<4x128xf32>
    %78 = arith.addf %66, %77 : vector<4x128xf32>
    %79 = vector.extract_strided_slice %1 {offsets = [0, 6, 0], sizes = [4, 1, 128], strides = [1, 1, 1]} : vector<4x8x128xf32> to vector<4x1x128xf32>
    %80 = vector.shape_cast %79 : vector<4x1x128xf32> to vector<4x128xf32>
    %81 = vector.broadcast %73 : vector<1x128xf32> to vector<4x128xf32>
    %82 = arith.mulf %81, %80 : vector<4x128xf32>
    %83 = arith.addf %71, %82 : vector<4x128xf32>
    %c0_20 = arith.constant 0 : index
    %c7 = arith.constant 7 : index
    %c0_21 = arith.constant 0 : index
    %84 = vector.load %arg0[%c0_20, %c7, %c0_21] : memref<2x8x128xf32, #tpu.memory_space<vmem>>, vector<1x1x128xf32>
    %85 = vector.shape_cast %84 : vector<1x1x128xf32> to vector<1x128xf32>
    %86 = vector.extract_strided_slice %0 {offsets = [0, 7, 0], sizes = [4, 1, 128], strides = [1, 1, 1]} : vector<4x8x128xf32> to vector<4x1x128xf32>
    %87 = vector.shape_cast %86 : vector<4x1x128xf32> to vector<4x128xf32>
    %88 = vector.broadcast %85 : vector<1x128xf32> to vector<4x128xf32>
    %89 = arith.mulf %88, %87 : vector<4x128xf32>
    %90 = arith.addf %78, %89 : vector<4x128xf32>
    %91 = vector.extract_strided_slice %1 {offsets = [0, 7, 0], sizes = [4, 1, 128], strides = [1, 1, 1]} : vector<4x8x128xf32> to vector<4x1x128xf32>
    %92 = vector.shape_cast %91 : vector<4x1x128xf32> to vector<4x128xf32>
    %93 = vector.broadcast %85 : vector<1x128xf32> to vector<4x128xf32>
    %94 = arith.mulf %93, %92 : vector<4x128xf32>
    %95 = arith.addf %83, %94 : vector<4x128xf32>
    %c0_22 = arith.constant 0 : index
    %c0_23 = arith.constant 0 : index
    %c0_24 = arith.constant 0 : index
    %96 = vector.load %arg3[%c0_22, %c0_23, %c0_24] : memref<2x4x128xf32, #tpu.memory_space<vmem>>, vector<1x4x128xf32>
    %97 = vector.shape_cast %96 : vector<1x4x128xf32> to vector<4x128xf32>
    %98 = vector.shape_cast %90 : vector<4x128xf32> to vector<1x4x128xf32>
    tpu.vector_store %arg3[%c0_22, %c0_23, %c0_24], %98 {strides = array<i32>} : memref<2x4x128xf32, #tpu.memory_space<vmem>>, vector<1x4x128xf32>,
    %c0_25 = arith.constant 0 : index
    %c0_26 = arith.constant 0 : index
    %c0_27 = arith.constant 0 : index
    %99 = vector.load %arg4[%c0_25, %c0_26, %c0_27] : memref<2x4x128xf32, #tpu.memory_space<vmem>>, vector<1x4x128xf32>
    %100 = vector.shape_cast %99 : vector<1x4x128xf32> to vector<4x128xf32>
    %101 = vector.shape_cast %95 : vector<4x128xf32> to vector<1x4x128xf32>
    tpu.vector_store %arg4[%c0_25, %c0_26, %c0_27], %101 {strides = array<i32>} : memref<2x4x128xf32, #tpu.memory_space<vmem>>, vector<1x4x128xf32>,
    %c1_28 = arith.constant 1 : index
    %c0_29 = arith.constant 0 : index
    %c0_30 = arith.constant 0 : index
    %102 = vector.load %arg0[%c1_28, %c0_29, %c0_30] : memref<2x8x128xf32, #tpu.memory_space<vmem>>, vector<1x1x128xf32>
    %103 = vector.shape_cast %102 : vector<1x1x128xf32> to vector<1x128xf32>
    %104 = vector.extract_strided_slice %0 {offsets = [0, 0, 0], sizes = [4, 1, 128], strides = [1, 1, 1]} : vector<4x8x128xf32> to vector<4x1x128xf32>
    %105 = vector.shape_cast %104 : vector<4x1x128xf32> to vector<4x128xf32>
    %106 = vector.broadcast %103 : vector<1x128xf32> to vector<4x128xf32>
    %107 = arith.mulf %106, %105 : vector<4x128xf32>
    %108 = vector.extract_strided_slice %1 {offsets = [0, 0, 0], sizes = [4, 1, 128], strides = [1, 1, 1]} : vector<4x8x128xf32> to vector<4x1x128xf32>
    %109 = vector.shape_cast %108 : vector<4x1x128xf32> to vector<4x128xf32>
    %110 = vector.broadcast %103 : vector<1x128xf32> to vector<4x128xf32>
    %111 = arith.mulf %110, %109 : vector<4x128xf32>
    %c1_31 = arith.constant 1 : index
    %c1_32 = arith.constant 1 : index
    %c0_33 = arith.constant 0 : index
    %112 = vector.load %arg0[%c1_31, %c1_32, %c0_33] : memref<2x8x128xf32, #tpu.memory_space<vmem>>, vector<1x1x128xf32>
    %113 = vector.shape_cast %112 : vector<1x1x128xf32> to vector<1x128xf32>
    %114 = vector.extract_strided_slice %0 {offsets = [0, 1, 0], sizes = [4, 1, 128], strides = [1, 1, 1]} : vector<4x8x128xf32> to vector<4x1x128xf32>
    %115 = vector.shape_cast %114 : vector<4x1x128xf32> to vector<4x128xf32>
    %116 = vector.broadcast %113 : vector<1x128xf32> to vector<4x128xf32>
    %117 = arith.mulf %116, %115 : vector<4x128xf32>
    %118 = arith.addf %107, %117 : vector<4x128xf32>
    %119 = vector.extract_strided_slice %1 {offsets = [0, 1, 0], sizes = [4, 1, 128], strides = [1, 1, 1]} : vector<4x8x128xf32> to vector<4x1x128xf32>
    %120 = vector.shape_cast %119 : vector<4x1x128xf32> to vector<4x128xf32>
    %121 = vector.broadcast %113 : vector<1x128xf32> to vector<4x128xf32>
    %122 = arith.mulf %121, %120 : vector<4x128xf32>
    %123 = arith.addf %111, %122 : vector<4x128xf32>
    %c1_34 = arith.constant 1 : index
    %c2_35 = arith.constant 2 : index
    %c0_36 = arith.constant 0 : index
    %124 = vector.load %arg0[%c1_34, %c2_35, %c0_36] : memref<2x8x128xf32, #tpu.memory_space<vmem>>, vector<1x1x128xf32>
    %125 = vector.shape_cast %124 : vector<1x1x128xf32> to vector<1x128xf32>
    %126 = vector.extract_strided_slice %0 {offsets = [0, 2, 0], sizes = [4, 1, 128], strides = [1, 1, 1]} : vector<4x8x128xf32> to vector<4x1x128xf32>
    %127 = vector.shape_cast %126 : vector<4x1x128xf32> to vector<4x128xf32>
    %128 = vector.broadcast %125 : vector<1x128xf32> to vector<4x128xf32>
    %129 = arith.mulf %128, %127 : vector<4x128xf32>
    %130 = arith.addf %118, %129 : vector<4x128xf32>
    %131 = vector.extract_strided_slice %1 {offsets = [0, 2, 0], sizes = [4, 1, 128], strides = [1, 1, 1]} : vector<4x8x128xf32> to vector<4x1x128xf32>
    %132 = vector.shape_cast %131 : vector<4x1x128xf32> to vector<4x128xf32>
    %133 = vector.broadcast %125 : vector<1x128xf32> to vector<4x128xf32>
    %134 = arith.mulf %133, %132 : vector<4x128xf32>
    %135 = arith.addf %123, %134 : vector<4x128xf32>
    %c1_37 = arith.constant 1 : index
    %c3_38 = arith.constant 3 : index
    %c0_39 = arith.constant 0 : index
    %136 = vector.load %arg0[%c1_37, %c3_38, %c0_39] : memref<2x8x128xf32, #tpu.memory_space<vmem>>, vector<1x1x128xf32>
    %137 = vector.shape_cast %136 : vector<1x1x128xf32> to vector<1x128xf32>
    %138 = vector.extract_strided_slice %0 {offsets = [0, 3, 0], sizes = [4, 1, 128], strides = [1, 1, 1]} : vector<4x8x128xf32> to vector<4x1x128xf32>
    %139 = vector.shape_cast %138 : vector<4x1x128xf32> to vector<4x128xf32>
    %140 = vector.broadcast %137 : vector<1x128xf32> to vector<4x128xf32>
    %141 = arith.mulf %140, %139 : vector<4x128xf32>
    %142 = arith.addf %130, %141 : vector<4x128xf32>
    %143 = vector.extract_strided_slice %1 {offsets = [0, 3, 0], sizes = [4, 1, 128], strides = [1, 1, 1]} : vector<4x8x128xf32> to vector<4x1x128xf32>
    %144 = vector.shape_cast %143 : vector<4x1x128xf32> to vector<4x128xf32>
    %145 = vector.broadcast %137 : vector<1x128xf32> to vector<4x128xf32>
    %146 = arith.mulf %145, %144 : vector<4x128xf32>
    %147 = arith.addf %135, %146 : vector<4x128xf32>
    %c1_40 = arith.constant 1 : index
    %c4_41 = arith.constant 4 : index
    %c0_42 = arith.constant 0 : index
    %148 = vector.load %arg0[%c1_40, %c4_41, %c0_42] : memref<2x8x128xf32, #tpu.memory_space<vmem>>, vector<1x1x128xf32>
    %149 = vector.shape_cast %148 : vector<1x1x128xf32> to vector<1x128xf32>
    %150 = vector.extract_strided_slice %0 {offsets = [0, 4, 0], sizes = [4, 1, 128], strides = [1, 1, 1]} : vector<4x8x128xf32> to vector<4x1x128xf32>
    %151 = vector.shape_cast %150 : vector<4x1x128xf32> to vector<4x128xf32>
    %152 = vector.broadcast %149 : vector<1x128xf32> to vector<4x128xf32>
    %153 = arith.mulf %152, %151 : vector<4x128xf32>
    %154 = arith.addf %142, %153 : vector<4x128xf32>
    %155 = vector.extract_strided_slice %1 {offsets = [0, 4, 0], sizes = [4, 1, 128], strides = [1, 1, 1]} : vector<4x8x128xf32> to vector<4x1x128xf32>
    %156 = vector.shape_cast %155 : vector<4x1x128xf32> to vector<4x128xf32>
    %157 = vector.broadcast %149 : vector<1x128xf32> to vector<4x128xf32>
    %158 = arith.mulf %157, %156 : vector<4x128xf32>
    %159 = arith.addf %147, %158 : vector<4x128xf32>
    %c1_43 = arith.constant 1 : index
    %c5_44 = arith.constant 5 : index
    %c0_45 = arith.constant 0 : index
    %160 = vector.load %arg0[%c1_43, %c5_44, %c0_45] : memref<2x8x128xf32, #tpu.memory_space<vmem>>, vector<1x1x128xf32>
    %161 = vector.shape_cast %160 : vector<1x1x128xf32> to vector<1x128xf32>
    %162 = vector.extract_strided_slice %0 {offsets = [0, 5, 0], sizes = [4, 1, 128], strides = [1, 1, 1]} : vector<4x8x128xf32> to vector<4x1x128xf32>
    %163 = vector.shape_cast %162 : vector<4x1x128xf32> to vector<4x128xf32>
    %164 = vector.broadcast %161 : vector<1x128xf32> to vector<4x128xf32>
    %165 = arith.mulf %164, %163 : vector<4x128xf32>
    %166 = arith.addf %154, %165 : vector<4x128xf32>
    %167 = vector.extract_strided_slice %1 {offsets = [0, 5, 0], sizes = [4, 1, 128], strides = [1, 1, 1]} : vector<4x8x128xf32> to vector<4x1x128xf32>
    %168 = vector.shape_cast %167 : vector<4x1x128xf32> to vector<4x128xf32>
    %169 = vector.broadcast %161 : vector<1x128xf32> to vector<4x128xf32>
    %170 = arith.mulf %169, %168 : vector<4x128xf32>
    %171 = arith.addf %159, %170 : vector<4x128xf32>
    %c1_46 = arith.constant 1 : index
    %c6_47 = arith.constant 6 : index
    %c0_48 = arith.constant 0 : index
    %172 = vector.load %arg0[%c1_46, %c6_47, %c0_48] : memref<2x8x128xf32, #tpu.memory_space<vmem>>, vector<1x1x128xf32>
    %173 = vector.shape_cast %172 : vector<1x1x128xf32> to vector<1x128xf32>
    %174 = vector.extract_strided_slice %0 {offsets = [0, 6, 0], sizes = [4, 1, 128], strides = [1, 1, 1]} : vector<4x8x128xf32> to vector<4x1x128xf32>
    %175 = vector.shape_cast %174 : vector<4x1x128xf32> to vector<4x128xf32>
    %176 = vector.broadcast %173 : vector<1x128xf32> to vector<4x128xf32>
    %177 = arith.mulf %176, %175 : vector<4x128xf32>
    %178 = arith.addf %166, %177 : vector<4x128xf32>
    %179 = vector.extract_strided_slice %1 {offsets = [0, 6, 0], sizes = [4, 1, 128], strides = [1, 1, 1]} : vector<4x8x128xf32> to vector<4x1x128xf32>
    %180 = vector.shape_cast %179 : vector<4x1x128xf32> to vector<4x128xf32>
    %181 = vector.broadcast %173 : vector<1x128xf32> to vector<4x128xf32>
    %182 = arith.mulf %181, %180 : vector<4x128xf32>
    %183 = arith.addf %171, %182 : vector<4x128xf32>
    %c1_49 = arith.constant 1 : index
    %c7_50 = arith.constant 7 : index
    %c0_51 = arith.constant 0 : index
    %184 = vector.load %arg0[%c1_49, %c7_50, %c0_51] : memref<2x8x128xf32, #tpu.memory_space<vmem>>, vector<1x1x128xf32>
    %185 = vector.shape_cast %184 : vector<1x1x128xf32> to vector<1x128xf32>
    %186 = vector.extract_strided_slice %0 {offsets = [0, 7, 0], sizes = [4, 1, 128], strides = [1, 1, 1]} : vector<4x8x128xf32> to vector<4x1x128xf32>
    %187 = vector.shape_cast %186 : vector<4x1x128xf32> to vector<4x128xf32>
    %188 = vector.broadcast %185 : vector<1x128xf32> to vector<4x128xf32>
    %189 = arith.mulf %188, %187 : vector<4x128xf32>
    %190 = arith.addf %178, %189 : vector<4x128xf32>
    %191 = vector.extract_strided_slice %1 {offsets = [0, 7, 0], sizes = [4, 1, 128], strides = [1, 1, 1]} : vector<4x8x128xf32> to vector<4x1x128xf32>
    %192 = vector.shape_cast %191 : vector<4x1x128xf32> to vector<4x128xf32>
    %193 = vector.broadcast %185 : vector<1x128xf32> to vector<4x128xf32>
    %194 = arith.mulf %193, %192 : vector<4x128xf32>
    %195 = arith.addf %183, %194 : vector<4x128xf32>
    %c1_52 = arith.constant 1 : index
    %c0_53 = arith.constant 0 : index
    %c0_54 = arith.constant 0 : index
    %196 = vector.load %arg3[%c1_52, %c0_53, %c0_54] : memref<2x4x128xf32, #tpu.memory_space<vmem>>, vector<1x4x128xf32>
    %197 = vector.shape_cast %196 : vector<1x4x128xf32> to vector<4x128xf32>
    %198 = vector.shape_cast %190 : vector<4x128xf32> to vector<1x4x128xf32>
    tpu.vector_store %arg3[%c1_52, %c0_53, %c0_54], %198 {strides = array<i32>} : memref<2x4x128xf32, #tpu.memory_space<vmem>>, vector<1x4x128xf32>,
    %c1_55 = arith.constant 1 : index
    %c0_56 = arith.constant 0 : index
    %c0_57 = arith.constant 0 : index
    %199 = vector.load %arg4[%c1_55, %c0_56, %c0_57] : memref<2x4x128xf32, #tpu.memory_space<vmem>>, vector<1x4x128xf32>
    %200 = vector.shape_cast %199 : vector<1x4x128xf32> to vector<4x128xf32>
    %201 = vector.shape_cast %195 : vector<4x128xf32> to vector<1x4x128xf32>
    tpu.vector_store %arg4[%c1_55, %c0_56, %c0_57], %201 {strides = array<i32>} : memref<2x4x128xf32, #tpu.memory_space<vmem>>, vector<1x4x128xf32>,
    return
  }
}

</mosaic_0001>

<bundles_post_ra>
// kernel: reverse.0
= control target key start
LH: loop header
LB: loop body
LE: loop exit
PB: predicated region body
PF: predicated region fallthrough
CT: control target
= control target key end

     0   :  { %v71_v3 = vlaneseq  ;;  %v64_v9 = vld [vmem:[#allocation0 + $0x7] ss:$-1 sm:$0xff]  ;;  %v78_v12 = vld [vmem:[#allocation0 + $0x17] ss:$-1 sm:$0xff]  ;;  %s329_s0 = inlined_call_operand.vmem [shape: f32[2,4,16,7], index: 0, kind: input, shape index: {}]   ;;  %s330_s1 = inlined_call_operand.vmem [shape: f32[2,4,16,7], index: 1, kind: output, shape index: {}]  }
   0x1   :  { %v44_v0 = vld [vmem:[%s329_s0] sm:$0xff]  ;;  %v46_v1 = vld [vmem:[%s329_s0 + $0x8] sm:$0xff]  ;;  %v48_v2 = vld [vmem:[%s329_s0 + $0x10] sm:$0xff]  ;;  %v65_v10 = vrot.slane %v64_v9, 1  ;;  %v79_v14 = vrot.slane %v78_v12, 1 }
   0x2   :  { %45 = vst [vmem:[#allocation0 + $0x8] sm:$0xff] %v44_v0  ;;  %47 = vst [vmem:[#allocation0 + $0x18] sm:$0xff] %v46_v1  ;;  %v50_v4 = vld [vmem:[%s329_s0 + $0x18] sm:$0xff]  ;;  %v52_v5 = vld [vmem:[%s329_s0 + $0x20] sm:$0xff]  ;;  %v72_v11 = vshrl.u32 %v71_v3, 7 }
   0x3   :  { %49 = vst [vmem:[#allocation0 + $0x28] sm:$0xff] %v48_v2  ;;  %v54_v6 = vld [vmem:[%s329_s0 + $0x28] sm:$0xff]  ;;  %51 = vst [vmem:[#allocation0 + $0x38] sm:$0xff] %v50_v4  ;;  %v56_v7 = vld [vmem:[%s329_s0 + $0x30] sm:$0xff] }
   0x4   :  { %53 = vst [vmem:[#allocation0 + $0x48] sm:$0xff] %v52_v5  ;;  %55 = vst [vmem:[#allocation0 + $0x58] sm:$0xff] %v54_v6  ;;  %v58_v8 = vld [vmem:[%s329_s0 + $0x38] sm:$0xff]  ;;  %v92_v13 = vld [vmem:[#allocation0 + $0x27] ss:$-1 sm:$0xff]  ;;  %vm73_vm0 = vcmp.lt.s32.totalorder %v72_v11, 7 }
   0x5   :  { %57 = vst [vmem:[#allocation0 + $0x68] sm:$0xff] %v56_v7  ;;  %59 = vst [vmem:[#allocation0 + $0x78] sm:$0xff] %v58_v8  ;;  %v93_v15 = vrot.slane %v92_v13, 1  ;;  %v106_v16 = vld [vmem:[#allocation0 + $0x37] ss:$-1 sm:$0xff] }
   0x6   :  { %66 = vst [vmem:[#allocation1] sm:$0xff] %v65_v10  ;;  %v107_v17 = vrot.slane %v106_v16, 1  ;;  %v120_v18 = vld [vmem:[#allocation0 + $0x47] ss:$-1 sm:$0xff]  ;;  %v134_v19 = vld [vmem:[#allocation0 + $0x57] ss:$-1 sm:$0xff] }
   0x7   :  { %80 = vst [vmem:[#allocation1 + $0x8] sm:$0xff] %v79_v14  ;;  %94 = vst [vmem:[#allocation1 + $0x10] sm:$0xff] %v93_v15  ;;  %v121_v20 = vrot.slane %v120_v18, 1  ;;  %v135_v21 = vrot.slane %v134_v19, 1  ;;  %v148_v22 = vld [vmem:[#allocation0 + $0x67] ss:$-1 sm:$0xff] }
   0x8   :  { %v162_v23 = vld [vmem:[#allocation0 + $0x77] ss:$-1 sm:$0xff]  ;;  %108 = vst [vmem:[#allocation1 + $0x18] sm:$0xff] %v107_v17  ;;  %v149_v24 = vrot.slane %v148_v22, 1 }
   0x9   :  { %v163_v25 = vrot.slane %v162_v23, 1  ;;  %v69_v26 = vld [vmem:[#allocation0 + $0xf] ss:$-1 sm:$0xff]  ;;  %v83_v27 = vld [vmem:[#allocation0 + $0x1f] ss:$-1 sm:$0xff]  ;;  %122 = vst [vmem:[#allocation1 + $0x20] sm:$0xff] %v121_v20 }
   0xa   :  { %v97_v28 = vld [vmem:[#allocation0 + $0x2f] ss:$-1 sm:$0xff]  ;;  %136 = vst [vmem:[#allocation1 + $0x28] sm:$0xff] %v135_v21  ;;  %v70_v29 = vrot.slane %v69_v26, 1  ;;  %v84_v30 = vrot.slane %v83_v27, 1  ;;  %150 = vst [vmem:[#allocation1 + $0x30] sm:$0xff] %v149_v24 }
   0xb   :  { %v98_v31 = vrot.slane %v97_v28, 1  ;;  %v111_v32 = vld [vmem:[#allocation0 + $0x3f] ss:$-1 sm:$0xff]  ;;  %164 = vst [vmem:[#allocation1 + $0x38] sm:$0xff] %v163_v25  ;;  %v125_v34 = vld [vmem:[#allocation0 + $0x4f] ss:$-1 sm:$0xff] }
   0xc   :  { %v112_v33 = vrot.slane %v111_v32, 1  ;;  %v139_v35 = vld [vmem:[#allocation0 + $0x5f] ss:$-1 sm:$0xff]  ;;  %74 = vst.msk [vmem:[#allocation1] sm:$0xff] %vm73_vm0, %v70_v29  ;;  %88 = vst.msk [vmem:[#allocation1 + $0x8] sm:$0xff] %vm73_vm0, %v84_v30  ;;  %v126_v36 = vrot.slane %v125_v34, 1 }
   0xd   :  { %102 = vst.msk [vmem:[#allocation1 + $0x10] sm:$0xff] %vm73_vm0, %v98_v31  ;;  %v140_v37 = vrot.slane %v139_v35, 1  ;;  %v153_v38 = vld [vmem:[#allocation0 + $0x6f] ss:$-1 sm:$0xff]  ;;  %v167_v39 = vld [vmem:[#allocation0 + $0x7f] ss:$-1 sm:$0xff] }
   0xe   :  { %116 = vst.msk [vmem:[#allocation1 + $0x18] sm:$0xff] %vm73_vm0, %v112_v33  ;;  %v154_v40 = vrot.slane %v153_v38, 1  ;;  %v168_v41 = vrot.slane %v167_v39, 1  ;;  %130 = vst.msk [vmem:[#allocation1 + $0x20] sm:$0xff] %vm73_vm0, %v126_v36 }
   0xf   :  { %144 = vst.msk [vmem:[#allocation1 + $0x28] sm:$0xff] %vm73_vm0, %v140_v37 }
  0x10   :  { %158 = vst.msk [vmem:[#allocation1 + $0x30] sm:$0xff] %vm73_vm0, %v154_v40  ;;  %172 = vst.msk [vmem:[#allocation1 + $0x38] sm:$0xff] %vm73_vm0, %v168_v41 }
  0x13   :  { %v214_v42 = vld [vmem:[#allocation1] sm:$0xff]  ;;  %v216_v43 = vld [vmem:[#allocation1 + $0x8] sm:$0xff] }
  0x14   :  { %v218_v44 = vld [vmem:[#allocation1 + $0x10] sm:$0xff]  ;;  %215 = vst [vmem:[%s330_s1] sm:$0xff] %v214_v42  ;;  %217 = vst [vmem:[%s330_s1 + $0x8] sm:$0xff] %v216_v43 }
  0x15   :  { %219 = vst [vmem:[%s330_s1 + $0x10] sm:$0xff] %v218_v44  ;;  %v220_v45 = vld [vmem:[#allocation1 + $0x18] sm:$0xff]  ;;  %v222_v46 = vld [vmem:[#allocation1 + $0x20] sm:$0xff] }
  0x16   :  { %221 = vst [vmem:[%s330_s1 + $0x18] sm:$0xff] %v220_v45  ;;  %v224_v47 = vld [vmem:[#allocation1 + $0x28] sm:$0xff]  ;;  %223 = vst [vmem:[%s330_s1 + $0x20] sm:$0xff] %v222_v46 }
  0x17   :  { %225 = vst [vmem:[%s330_s1 + $0x28] sm:$0xff] %v224_v47  ;;  %v226_v48 = vld [vmem:[#allocation1 + $0x30] sm:$0xff]  ;;  %v228_v49 = vld [vmem:[#allocation1 + $0x38] sm:$0xff] }
  0x18   :  { %227 = vst [vmem:[%s330_s1 + $0x30] sm:$0xff] %v226_v48  ;;  %229 = vst [vmem:[%s330_s1 + $0x38] sm:$0xff] %v228_v49 }

// kernel: fourier_conv_2d_forward.1
= control target key start
LH: loop header
LB: loop body
LE: loop exit
PB: predicated region body
PF: predicated region fallthrough
CT: control target
= control target key end

     0   :  { %vm34_vm0 = vcmask 1041409   ;;  %vm37_vm1 = vcmask 1042434   ;;  %vm40_vm2 = vcmask 1043459   ;;  %s645_s1 = inlined_call_operand.vmem [shape: f32[4,8,128], index: 1, kind: input, shape index: {}]   ;;  %s646_s0 = inlined_call_operand.vmem [shape: f32[2,8,128], index: 0, kind: input, shape index: {}]   ;;  %s647_s2 = inlined_call_operand.vmem [shape: f32[4,8,128], index: 2, kind: input, shape index: {}]   ;;  %s648_s3 = inlined_call_operand.vmem [shape: f32[2,4,128], index: 3, kind: output, shape index: {0}]   ;;  %s649_s4 = inlined_call_operand.vmem [shape: f32[2,4,128], index: 4, kind: output, shape index: {1}]  }
   0x1   :  { %v364_v0 = vld [vmem:[%s645_s1] sm:$0xff]  ;;  %v369_v1 = vld [vmem:[%s645_s1 + $0x8] sm:$0xff]  ;;  %v374_v2 = vld [vmem:[%s645_s1 + $0x10] sm:$0xff] }
   0x2   :  { %v379_v3 = vld [vmem:[%s645_s1 + $0x18] sm:$0xff]  ;;  %v33_v4 = vrot.slane %v369_v1, 7  ;;  %v36_v5 = vrot.slane %v374_v2, 6  ;;  %v61_v6 = vrot.slane %v364_v0, 1  ;;  %v63_v8 = vrot.slane %v374_v2, 7  ;;  %v486_v62 = vld [vmem:[%s647_s2 + $0x8] sm:$0xff] }
   0x3   :  { %v39_v7 = vrot.slane %v379_v3, 5  ;;  %v65_v9 = vrot.slane %v379_v3, 6  ;;  %v84_v10 = vrot.slane %v364_v0, 2  ;;  %v391_v11 = vld [vmem:[%s646_s0] ss:$0 sm:$0xff]  ;;  %v85_v15 = vrot.slane %v369_v1, 1 }
   0x4   :  { %v35_v12 = vsel %vm34_vm0, %v33_v4, %v364_v0  ;;  %v398_v13 = vld [vmem:[%s646_s0 + $0x1] ss:$0 sm:$0xff]  ;;  %v62_v14 = vsel %vm34_vm0, %v369_v1, %v61_v6  ;;  %v88_v16 = vrot.slane %v379_v3, 7  ;;  %v107_v19 = vrot.slane %v364_v0, 3  ;;  %v417_v23 = vld [vmem:[%s646_s0 + $0x2] ss:$0 sm:$0xff] }
   0x5   :  { %v38_v17 = vsel %vm37_vm1, %v36_v5, %v35_v12  ;;  %v64_v18 = vsel %vm37_vm1, %v63_v8, %v62_v14  ;;  %v108_v20 = vrot.slane %v369_v1, 2  ;;  %v86_v24 = vsel %vm34_vm0, %v85_v15, %v84_v10  ;;  %v430_v29 = vld [vmem:[%s646_s0 + $0x3] ss:$0 sm:$0xff]  ;;  %v451_v40 = vld [vmem:[%s646_s0 + $0x4] ss:$0 sm:$0xff]  ;;  %v491_v63 = vld [vmem:[%s647_s2 + $0x10] sm:$0xff] }
   0x6   :  { %v409_v21 = vsel %vm40_vm2, %v39_v7, %v38_v17  ;;  %v412_v22 = vsel %vm40_vm2, %v65_v9, %v64_v18  ;;  %v110_v25 = vrot.slane %v374_v2, 1  ;;  %v87_v28 = vsel %vm37_vm1, %v374_v2, %v86_v24  ;;  %v470_v54 = vld [vmem:[%s646_s0 + $0x5] ss:$0 sm:$0xff]  ;;  %v478_v58 = vld [vmem:[%s646_s0 + $0x6] ss:$0 sm:$0xff]  ;;  %v506_v8 = vld [vmem:[%s647_s2 + $0x18] sm:$0xff] }
   0x7   :  { %v43_v26 = vmul.f32 %v391_v11, %v409_v21  ;;  %v68_v27 = vmul.f32 %v398_v13, %v412_v22  ;;  %v109_v30 = vsel %vm34_vm0, %v108_v20, %v107_v19  ;;  %v434_v31 = vsel %vm40_vm2, %v88_v16, %v87_v28  ;;  %v520_v15 = vld [vmem:[%s646_s0 + $0x7] ss:$0 sm:$0xff] }
   0x8   :  { %v111_v32 = vsel %vm37_vm1, %v110_v25, %v109_v30  ;;  %v130_v33 = vrot.slane %v364_v0, 4  ;;  %v131_v34 = vrot.slane %v369_v1, 3  ;;  %v91_v36 = vmul.f32 %v417_v23, %v434_v31 }
   0x9   :  { %v69_v35 = vadd.f32 %v68_v27, %v43_v26  ;;  %v443_v37 = vsel %vm40_vm2, %v379_v3, %v111_v32  ;;  %v133_v38 = vrot.slane %v374_v2, 2  ;;  %v135_v42 = vrot.slane %v379_v3, 1 }
   0xa   :  { %v114_v39 = vmul.f32 %v430_v29, %v443_v37  ;;  %v132_v41 = vsel %vm34_vm0, %v131_v34, %v130_v33  ;;  %v155_v43 = vrot.slane %v364_v0, 5  ;;  %v156_v46 = vrot.slane %v369_v1, 4 }
   0xb   :  { %v92_v44 = vadd.f32 %v91_v36, %v69_v35  ;;  %v134_v45 = vsel %vm37_vm1, %v133_v38, %v132_v41  ;;  %v158_v47 = vrot.slane %v374_v2, 3  ;;  %v160_v49 = vrot.slane %v379_v3, 2 }
   0xc   :  { %v460_v48 = vsel %vm40_vm2, %v135_v42, %v134_v45  ;;  %v180_v50 = vrot.slane %v364_v0, 6  ;;  %v181_v51 = vrot.slane %v369_v1, 5  ;;  %v157_v55 = vsel %vm34_vm0, %v156_v46, %v155_v43 }
   0xd   :  { %v115_v52 = vadd.f32 %v114_v39, %v92_v44  ;;  %v138_v53 = vmul.f32 %v451_v40, %v460_v48  ;;  %v183_v56 = vrot.slane %v374_v2, 4  ;;  %v159_v57 = vsel %vm37_vm1, %v158_v47, %v157_v55 }
   0xe   :  { %v182_v59 = vsel %vm34_vm0, %v181_v51, %v180_v50  ;;  %v185_v60 = vrot.slane %v379_v3, 3  ;;  %v205_v61 = vrot.slane %v364_v0, 7  ;;  %v494_v5 = vsel %vm40_vm2, %v160_v49, %v159_v57  ;;  %v501_v0 = vld [vmem:[%s647_s2] sm:$0xff] }
   0xf   :  { %v139_v4 = vadd.f32 %v138_v53, %v115_v52  ;;  %v184_v6 = vsel %vm37_vm1, %v183_v56, %v182_v59  ;;  %v206_v7 = vrot.slane %v369_v1, 6  ;;  %v163_v9 = vmul.f32 %v470_v54, %v494_v5 }
  0x10   :  { %v511_v10 = vsel %vm40_vm2, %v185_v60, %v184_v6  ;;  %v208_v12 = vrot.slane %v374_v2, 5  ;;  %v210_v1 = vrot.slane %v379_v3, 4  ;;  %v48_v17 = vrot.slane %v486_v62, 7 }
  0x11   :  { %v188_v14 = vmul.f32 %v478_v58, %v511_v10  ;;  %v207_v16 = vsel %vm34_vm0, %v206_v7, %v205_v61  ;;  %v50_v18 = vrot.slane %v491_v63, 6  ;;  %v164_v19 = vadd.f32 %v163_v9, %v139_v4 }
  0x12   :  { %v209_v20 = vsel %vm37_vm1, %v208_v12, %v207_v16  ;;  %v52_v2 = vrot.slane %v506_v8, 5  ;;  %v70_v3 = vrot.slane %v501_v0, 1  ;;  %v49_v25 = vsel %vm34_vm0, %v48_v17, %v501_v0 }
  0x13   :  { %v529_v24 = vsel %vm40_vm2, %v210_v1, %v209_v20  ;;  %v72_v26 = vrot.slane %v491_v63, 7  ;;  %v74_v27 = vrot.slane %v506_v8, 6  ;;  %v189_v28 = vadd.f32 %v188_v14, %v164_v19 }
  0x14   :  { %v213_v30 = vmul.f32 %v520_v15, %v529_v24  ;;  %v51_v32 = vsel %vm37_vm1, %v50_v18, %v49_v25  ;;  %v71_v33 = vsel %vm34_vm0, %v486_v62, %v70_v3  ;;  %v93_v36 = vrot.slane %v501_v0, 2 }
  0x15   :  { %v541_v34 = vsel %vm40_vm2, %v52_v2, %v51_v32  ;;  %v73_v35 = vsel %vm37_vm1, %v72_v26, %v71_v33  ;;  %v94_v38 = vrot.slane %v486_v62, 1  ;;  %v97_v43 = vrot.slane %v506_v8, 7 }
  0x16   :  { %v214_v39 = vadd.f32 %v213_v30, %v189_v28  ;;  %v55_v41 = vmul.f32 %v391_v11, %v541_v34  ;;  %v549_v42 = vsel %vm40_vm2, %v74_v27, %v73_v35  ;;  %v116_v46 = vrot.slane %v501_v0, 3  ;;  %v321_v28 = vld [vmem:[%s646_s0 + $0x9] ss:$0 sm:$0xff] }
  0x17   :  { %v77_v44 = vmul.f32 %v398_v13, %v549_v42  ;;  %v95_v45 = vsel %vm34_vm0, %v94_v38, %v93_v36  ;;  %v117_v47 = vrot.slane %v486_v62, 2  ;;  %v119_v49 = vrot.slane %v491_v63, 1  ;;  %v323_v36 = vld [vmem:[%s646_s0 + $0xa] ss:$0 sm:$0xff] }
  0x18   :  { %225 = vst [vmem:[%s648_s3] sm:$0xf] %v214_v39  ;;  %v96_v11 = vsel %vm37_vm1, %v491_v63, %v95_v45  ;;  %v140_v50 = vrot.slane %v501_v0, 4  ;;  %v141_v51 = vrot.slane %v486_v62, 3  ;;  %v143_v55 = vrot.slane %v491_v63, 2 }
  0x19   :  { %v78_v13 = vadd.f32 %v77_v44, %v55_v41  ;;  %v98_v52 = vsel %vm40_vm2, %v97_v43, %v96_v11  ;;  %v118_v53 = vsel %vm34_vm0, %v117_v47, %v116_v46  ;;  %v145_v60 = vrot.slane %v506_v8, 1 }
  0x1a   :  { %v100_v56 = vmul.f32 %v417_v23, %v98_v52  ;;  %v120_v57 = vsel %vm37_vm1, %v119_v49, %v118_v53  ;;  %v142_v59 = vsel %vm34_vm0, %v141_v51, %v140_v50  ;;  %v165_v6 = vrot.slane %v501_v0, 5 }
  0x1b   :  { %v121_v61 = vsel %vm40_vm2, %v506_v8, %v120_v57  ;;  %v144_v4 = vsel %vm37_vm1, %v143_v55, %v142_v59  ;;  %v166_v7 = vrot.slane %v486_v62, 4  ;;  %v168_v1 = vrot.slane %v491_v63, 3 }
  0x1c   :  { %v101_v9 = vadd.f32 %v100_v56, %v78_v13  ;;  %v123_v12 = vmul.f32 %v430_v29, %v121_v61  ;;  %v146_v23 = vsel %vm40_vm2, %v145_v60, %v144_v4  ;;  %v170_v17 = vrot.slane %v506_v8, 2  ;;  %v319_v29 = vld [vmem:[%s646_s0 + $0x8] ss:$0 sm:$0xff] }
  0x1d   :  { %v148_v14 = vmul.f32 %v451_v40, %v146_v23  ;;  %v167_v16 = vsel %vm34_vm0, %v166_v7, %v165_v6  ;;  %v190_v18 = vrot.slane %v501_v0, 6  ;;  %v191_v2 = vrot.slane %v486_v62, 5 }
  0x1e   :  { %v124_v19 = vadd.f32 %v123_v12, %v101_v9  ;;  %v169_v20 = vsel %vm37_vm1, %v168_v1, %v167_v16  ;;  %v193_v3 = vrot.slane %v491_v63, 4  ;;  %v195_v40 = vrot.slane %v506_v8, 3 }
  0x1f   :  { %v171_v25 = vsel %vm40_vm2, %v170_v17, %v169_v20  ;;  %v215_v26 = vrot.slane %v501_v0, 7  ;;  %v216_v27 = vrot.slane %v486_v62, 6  ;;  %v192_v33 = vsel %vm34_vm0, %v191_v2, %v190_v18 }
  0x20   :  { %v149_v30 = vadd.f32 %v148_v14, %v124_v19  ;;  %v173_v32 = vmul.f32 %v470_v54, %v171_v25  ;;  %v218_v35 = vrot.slane %v491_v63, 5  ;;  %v194_v38 = vsel %vm37_vm1, %v193_v3, %v192_v33  ;;  %v325_v54 = vld [vmem:[%s646_s0 + $0xb] ss:$0 sm:$0xff] }
  0x21   :  { %v217_v0 = vsel %vm34_vm0, %v216_v27, %v215_v26  ;;  %v220_v62 = vrot.slane %v506_v8, 4  ;;  %v233_v39 = vmul.f32 %v319_v29, %v409_v21  ;;  %v196_v43 = vsel %vm40_vm2, %v195_v40, %v194_v38  ;;  %v327_v21 = vld [vmem:[%s646_s0 + $0xc] ss:$0 sm:$0xff] }
  0x22   :  { %v174_v41 = vadd.f32 %v173_v32, %v149_v30  ;;  %v219_v63 = vsel %vm37_vm1, %v218_v35, %v217_v0  ;;  %v240_v44 = vmul.f32 %v321_v28, %v412_v22  ;;  %v198_v45 = vmul.f32 %v478_v58, %v196_v43  ;;  %v329_v22 = vld [vmem:[%s646_s0 + $0xd] ss:$0 sm:$0xff] }
  0x23   :  { %v221_v46 = vsel %vm40_vm2, %v220_v62, %v219_v63  ;;  %v249_v47 = vmul.f32 %v323_v36, %v434_v31  ;;  %v258_v49 = vmul.f32 %v325_v54, %v443_v37  ;;  %v234_v58 = vmul.f32 %v319_v29, %v541_v34 }
  0x24   :  { %v223_v8 = vmul.f32 %v520_v15, %v221_v46  ;;  %v241_v11 = vadd.f32 %v240_v44, %v233_v39  ;;  %v199_v50 = vadd.f32 %v198_v45, %v174_v41  ;;  %v267_v13 = vmul.f32 %v327_v21, %v460_v48  ;;  %v331_v15 = vld [vmem:[%s646_s0 + $0xe] ss:$0 sm:$0xff]  ;;  %v333_v48 = vld [vmem:[%s646_s0 + $0xf] ss:$0 sm:$0xff] }
  0x25   :  { %v242_v31 = vmul.f32 %v321_v28, %v549_v42  ;;  %v251_v53 = vmul.f32 %v323_v36, %v98_v52  ;;  %v276_v37 = vmul.f32 %v329_v22, %v494_v5  ;;  %v260_v59 = vmul.f32 %v325_v54, %v121_v61 }
  0x26   :  { %v250_v51 = vadd.f32 %v249_v47, %v241_v11  ;;  %v224_v55 = vadd.f32 %v223_v8, %v199_v50  ;;  %v285_v42 = vmul.f32 %v331_v15, %v511_v10  ;;  %v269_v60 = vmul.f32 %v327_v21, %v146_v23 }
  0x27   :  { %v243_v57 = vadd.f32 %v242_v31, %v234_v58  ;;  %v294_v6 = vmul.f32 %v333_v48, %v529_v24  ;;  %v278_v5 = vmul.f32 %v329_v22, %v171_v25  ;;  %v287_v12 = vmul.f32 %v331_v15, %v196_v43 }
  0x28   :  { %v259_v56 = vadd.f32 %v258_v49, %v250_v51  ;;  %226 = vst [vmem:[%s649_s4] sm:$0xf] %v224_v55  ;;  %v296_v16 = vmul.f32 %v333_v48, %v221_v46 }
  0x29   :  { %v252_v52 = vadd.f32 %v251_v53, %v243_v57 }
  0x2a   :  { %v268_v34 = vadd.f32 %v267_v13, %v259_v56 }
  0x2b   :  { %v261_v7 = vadd.f32 %v260_v59, %v252_v52 }
  0x2c   :  { %v277_v4 = vadd.f32 %v276_v37, %v268_v34 }
  0x2d   :  { %v270_v61 = vadd.f32 %v269_v60, %v261_v7 }
  0x2e   :  { %v286_v9 = vadd.f32 %v285_v42, %v277_v4 }
  0x2f   :  { %v279_v14 = vadd.f32 %v278_v5, %v270_v61 }
  0x30   :  { %v295_v1 = vadd.f32 %v294_v6, %v286_v9 }
  0x31   :  { %v288_v17 = vadd.f32 %v287_v12, %v279_v14 }
  0x32   :  { %334 = vst [vmem:[%s648_s3 + $0x4] sm:$0xf] %v295_v1 }
  0x33   :  { %v297_v18 = vadd.f32 %v296_v16, %v288_v17 }
  0x35   :  { %335 = vst [vmem:[%s649_s4 + $0x4] sm:$0xf] %v297_v18 }

</bundles_post_ra>
